<compile_context>
chip_gen: v5e
topology: v5e:2x2
jax: 0.10.0
libtpu: 0.0.40
codegen_flags: <defaults>
</compile_context>

<pallas_src>
import functools
import math

import jax
import jax.numpy as jnp
from jax.experimental import pallas as pl
from jax.experimental.pallas import tpu as pltpu


def _focal_loss_kernel(x_ref, t_ref, *rest, gamma, has_alpha):
    if has_alpha:
        a_ref, loss_ref = rest
    else:
        (loss_ref,) = rest

    x = x_ref[0].astype(jnp.float32)          # (C, TN) logits
    t = t_ref[0]                              # (1, TN) int32 targets
    num_classes, tn = x.shape

    # log-softmax along the class (sublane) axis
    m = jnp.max(x, axis=0, keepdims=True)                                # (1, TN)
    lse = m + jnp.log(jnp.sum(jnp.exp(x - m), axis=0, keepdims=True))    # (1, TN)

    # gather the target-class logit via a one-hot select (vector compare
    # against a class iota; no scalar gather loop)
    cls = jax.lax.broadcasted_iota(jnp.int32, (num_classes, tn), 0)
    onehot = cls == t                                                    # (C, TN)
    x_t = jnp.sum(jnp.where(onehot, x, 0.0), axis=0, keepdims=True)      # (1, TN)

    logpt = x_t - lse                                                    # (1, TN)
    pt = jnp.exp(logpt)          # pt is computed BEFORE the alpha weighting

    if has_alpha:
        a = a_ref[...].astype(jnp.float32)                               # (C, 1)
        at = jnp.sum(jnp.where(onehot, a, 0.0), axis=0, keepdims=True)   # (1, TN)
        logpt = logpt * at

    one_minus_pt = 1.0 - pt
    g = float(gamma)
    if g == int(g) and g >= 0:
        # integer gamma (default gamma=2): cheap repeated multiply, no EUP
        focal = jnp.ones_like(pt)
        for _ in range(int(g)):
            focal = focal * one_minus_pt
    else:
        # general real gamma via exp(g*log(.)), guarded at (1-pt)==0
        safe = jnp.maximum(one_minus_pt, jnp.float32(1e-30))
        focal = jnp.where(one_minus_pt > 0.0,
                          jnp.exp(g * jnp.log(safe)),
                          jnp.float32(0.0))

    loss_ref[0] = -focal * logpt                                         # (1, TN)


def _convert_alpha(alpha, num_classes):
    """Mirror the PyTorch __init__ alpha handling."""
    if alpha is None:
        return None
    if isinstance(alpha, (float, int)):
        a = jnp.array([alpha, 1.0 - alpha], dtype=jnp.float32)
    elif isinstance(alpha, (list, tuple)):
        a = jnp.array(alpha, dtype=jnp.float32)
    else:
        a = jnp.asarray(alpha, dtype=jnp.float32)
    assert a.shape[0] == num_classes, "alpha needs one weight per class"
    return a


def _pick_tile(n, cap=4096):
    """Largest lane-dense tile (multiple of 128) dividing n, capped; else full n."""
    if n % 128 != 0:
        return n
    tn = min(n, cap)
    while n % tn != 0:
        tn -= 128
    return tn


def focal_loss(inputs, target, gamma=2, alpha=None, size_average=True):
    """Pallas TPU implementation of FocalLoss.forward."""
    if inputs.ndim > 2:
        batch, num_classes = inputs.shape[0], inputs.shape[1]
        n = math.prod(inputs.shape[2:])
        x = inputs.reshape(batch, num_classes, n)        # native layout, no transpose
    else:
        # 2-D (rows, classes): put classes on sublanes, rows on lanes.
        rows, num_classes = inputs.shape
        batch, n = 1, rows
        x = inputs.T.reshape(1, num_classes, rows)

    t = target.reshape(batch, 1, n).astype(jnp.int32)
    alpha_arr = _convert_alpha(alpha, num_classes)

    tn = _pick_tile(n)
    grid = (batch, n // tn)

    in_specs = [
        pl.BlockSpec((1, num_classes, tn), lambda b, j: (b, 0, j)),
        pl.BlockSpec((1, 1, tn), lambda b, j: (b, 0, j)),
    ]
    args = [x, t]
    if alpha_arr is not None:
        in_specs.append(pl.BlockSpec((num_classes, 1), lambda b, j: (0, 0)))
        args.append(alpha_arr.reshape(num_classes, 1))

    kernel = functools.partial(_focal_loss_kernel, gamma=float(gamma),
                               has_alpha=alpha_arr is not None)
    losses = pl.pallas_call(
        kernel,
        out_shape=jax.ShapeDtypeStruct((batch, 1, n), jnp.float32),
        grid_spec=pltpu.PrefetchScalarGridSpec(
            num_scalar_prefetch=0,
            grid=grid,
            in_specs=in_specs,
            out_specs=pl.BlockSpec((1, 1, tn), lambda b, j: (b, 0, j)),
        ),
        compiler_params=pltpu.CompilerParams(
            dimension_semantics=("parallel", "parallel")),
    )(*args)

    # final reduction over the B*N positions (tiny) done in plain JAX
    return jnp.mean(losses) if size_average else jnp.sum(losses)


def focal_loss_ref(inputs, target, gamma=2, alpha=None, size_average=True):
    """Pure-JAX reference mirroring the PyTorch forward exactly."""
    if inputs.ndim > 2:
        batch, num_classes = inputs.shape[0], inputs.shape[1]
        x = inputs.reshape(batch, num_classes, -1)
        x = jnp.transpose(x, (0, 2, 1)).reshape(-1, num_classes)
    else:
        x = inputs
        num_classes = x.shape[1]
    t = target.reshape(-1).astype(jnp.int32)
    logp = jax.nn.log_softmax(x.astype(jnp.float32), axis=1)
    logpt = jnp.take_along_axis(logp, t[:, None], axis=1)[:, 0]
    pt = jnp.exp(logpt)
    if alpha is not None:
        a = _convert_alpha(alpha, num_classes)
        logpt = logpt * a[t]
    loss = -((1.0 - pt) ** gamma) * logpt
    return loss.mean() if size_average else loss.sum()


if __name__ == "__main__":
    key = jax.random.PRNGKey(0)
    k_in, k_tgt = jax.random.split(key)
    B, C, H, W = 2, 4, 16, 16
    logits = jax.random.normal(k_in, (B, C, H, W), dtype=jnp.float32)
    target = jax.random.randint(k_tgt, (B, H, W), 0, C, dtype=jnp.int32)

    # default FocalLoss(gamma=2, alpha=None, size_average=True)
    out = jax.block_until_ready(focal_loss(logits, target))
    ref = focal_loss_ref(logits, target)
    assert jnp.allclose(out, ref, rtol=1e-5, atol=1e-6), (out, ref)

    # alpha-weighted + sum-reduction path
    alpha = [0.25, 0.75, 0.5, 0.5]
    out_a = jax.block_until_ready(
        focal_loss(logits, target, gamma=2, alpha=alpha, size_average=False))
    ref_a = focal_loss_ref(logits, target, gamma=2, alpha=alpha,
                           size_average=False)
    assert jnp.allclose(out_a, ref_a, rtol=1e-5, atol=1e-5), (out_a, ref_a)

    print("KERNEL_OK")
</pallas_src>

<mosaic_0001>
module attributes {stable_mosaic.version = 11 : i64} {
  func.func @_focal_loss_kernel(%arg0: i32, %arg1: i32, %arg2: memref<1x4x256xf32, #tpu.memory_space<vmem>>, %arg3: memref<1x1x256xi32, #tpu.memory_space<vmem>>, %arg4: memref<1x1x256xf32, #tpu.memory_space<vmem>>) attributes {dimension_semantics = [#tpu.dimension_semantics<parallel>, #tpu.dimension_semantics<parallel>], iteration_bounds = array<i64: 2, 1>, scalar_prefetch = 0 : i64, scratch_operands = 0 : i64, tpu.core_type = #tpu.core_type<tc>, window_params = [{transform_indices = @transform_0, window_bounds = array<i64: 1, 4, 256>}, {transform_indices = @transform_1, window_bounds = array<i64: 1, 1, 256>}, {transform_indices = @transform_2, window_bounds = array<i64: 1, 1, 256>}]} {
    %c0 = arith.constant 0 : index
    %c0_0 = arith.constant 0 : index
    %c0_1 = arith.constant 0 : index
    %0 = vector.load %arg2[%c0, %c0_0, %c0_1] : memref<1x4x256xf32, #tpu.memory_space<vmem>>, vector<1x4x256xf32>
    %1 = vector.shape_cast %0 : vector<1x4x256xf32> to vector<4x256xf32>
    %c0_2 = arith.constant 0 : index
    %c0_3 = arith.constant 0 : index
    %c0_4 = arith.constant 0 : index
    %2 = vector.load %arg3[%c0_2, %c0_3, %c0_4] : memref<1x1x256xi32, #tpu.memory_space<vmem>>, vector<1x1x256xi32>
    %3 = vector.shape_cast %2 : vector<1x1x256xi32> to vector<1x256xi32>
    %cst = arith.constant dense<0xFF800000> : vector<256xf32>
    %4 = vector.multi_reduction <maximumf>, %1, %cst [0] : vector<4x256xf32> to vector<256xf32>
    %5 = vector.shape_cast %4 : vector<256xf32> to vector<1x256xf32>
    %6 = vector.broadcast %5 : vector<1x256xf32> to vector<4x256xf32>
    %7 = arith.subf %1, %6 : vector<4x256xf32>
    %8 = math.exp %7 : vector<4x256xf32>
    %cst_5 = arith.constant dense<0.000000e+00> : vector<256xf32>
    %9 = vector.multi_reduction <add>, %8, %cst_5 [0] : vector<4x256xf32> to vector<256xf32>
    %10 = vector.shape_cast %9 : vector<256xf32> to vector<1x256xf32>
    %11 = math.log %10 : vector<1x256xf32>
    %12 = arith.addf %5, %11 : vector<1x256xf32>
    %13 = tpu.iota {dimensions = array<i32: 0>} : vector<4x256xi32>
    %14 = vector.broadcast %3 : vector<1x256xi32> to vector<4x256xi32>
    %15 = arith.cmpi eq, %13, %14 : vector<4x256xi32>
    %cst_6 = arith.constant 0.000000e+00 : f32
    %16 = vector.broadcast %cst_6 : f32 to vector<4x256xf32>
    %17 = arith.select %15, %1, %16 : vector<4x256xi1>, vector<4x256xf32>
    %cst_7 = arith.constant dense<0.000000e+00> : vector<256xf32>
    %18 = vector.multi_reduction <add>, %17, %cst_7 [0] : vector<4x256xf32> to vector<256xf32>
    %19 = vector.shape_cast %18 : vector<256xf32> to vector<1x256xf32>
    %20 = arith.subf %19, %12 : vector<1x256xf32>
    %21 = math.exp %20 : vector<1x256xf32>
    %cst_8 = arith.constant 1.000000e+00 : f32
    %22 = vector.broadcast %cst_8 : f32 to vector<1x256xf32>
    %23 = arith.subf %22, %21 : vector<1x256xf32>
    %cst_9 = arith.constant 1.000000e+00 : f32
    %24 = vector.broadcast %cst_9 : f32 to vector<1x256xf32>
    %25 = arith.mulf %24, %23 : vector<1x256xf32>
    %26 = arith.mulf %25, %23 : vector<1x256xf32>
    %cst_10 = arith.constant 0.000000e+00 : f32
    %27 = vector.broadcast %cst_10 : f32 to vector<1x256xf32>
    %28 = arith.subf %27, %26 : vector<1x256xf32>
    %29 = arith.mulf %28, %20 : vector<1x256xf32>
    %c0_11 = arith.constant 0 : index
    %c0_12 = arith.constant 0 : index
    %c0_13 = arith.constant 0 : index
    %30 = vector.load %arg4[%c0_11, %c0_12, %c0_13] : memref<1x1x256xf32, #tpu.memory_space<vmem>>, vector<1x1x256xf32>
    %31 = vector.shape_cast %30 : vector<1x1x256xf32> to vector<1x256xf32>
    %32 = vector.shape_cast %29 : vector<1x256xf32> to vector<1x1x256xf32>
    tpu.vector_store %arg4[%c0_11, %c0_12, %c0_13], %32 {strides = array<i32>} : memref<1x1x256xf32, #tpu.memory_space<vmem>>, vector<1x1x256xf32>,
    return
  }
  func.func @transform_0(%arg0: i32, %arg1: i32) -> (i32, i32, i32) {
    %c0_i32 = arith.constant 0 : i32
    %c0_i32_0 = arith.constant 0 : i32
    return %arg0, %c0_i32, %arg1 : i32, i32, i32
  }
  func.func @transform_1(%arg0: i32, %arg1: i32) -> (i32, i32, i32) {
    %c0_i32 = arith.constant 0 : i32
    %c0_i32_0 = arith.constant 0 : i32
    return %arg0, %c0_i32, %arg1 : i32, i32, i32
  }
  func.func @transform_2(%arg0: i32, %arg1: i32) -> (i32, i32, i32) {
    %c0_i32 = arith.constant 0 : i32
    %c0_i32_0 = arith.constant 0 : i32
    return %arg0, %c0_i32, %arg1 : i32, i32, i32
  }
}

</mosaic_0001>

<bundles_post_ra>
// kernel: tpu_custom_call.1
= control target key start
LH: loop header
LB: loop body
LE: loop exit
PB: predicated region body
PF: predicated region fallthrough
CT: control target
= control target key end

     0   :  { %7 = vsyncpa [#allocation3], 0  ;;  %s870_s0 = inlined_call_operand.hbm [shape: f32[2,4,256], index: 0, kind: input, shape index: {}]   ;;  %s871_s1 = inlined_call_operand.hbm [shape: s32[2,1,256], index: 1, kind: input, shape index: {}]   ;;  %s872_s2 = inlined_call_operand.hbm [shape: f32[2,1,256], index: 2, kind: output, shape index: {}]  }
   0x1   :  { %9 = vsyncpa [#allocation3 + $0x1], 0 }
   0x2   :  { %10 = vsyncpa [#allocation6], 0 }
   0x3   :  { %12 = vsyncpa [#allocation6 + $0x1], 0 }
   0x4   :  { %13 = vsyncpa [#allocation4], 0 }
   0x5   :  { %15 = vsyncpa [#allocation4 + $0x1], 0  ;;  %s719_s9 = smov 0   ;;  %s721_s10 = smov 0  }
   0x6   :  { %s723_s11 = smov 0   ;;  %s725_s12 = smov 0  }
   0x7   :  { %s727_s13 = smov 0   ;;  %s729_s14 = smov 0  }
   0x8 LB: > { %s461_s15 = sadd.s32 4294967295, %s702_s14   ;;  %s462_s16 = sadd.s32 4294967294, %s702_s14   ;;  %s702_s14 = sphi %s729_s14, %s21_s14   ;;  %s698_s13 = sphi %s727_s13, %s882_s13   ;;  %s694_s12 = sphi %s725_s12, %s881_s12   ;;  %s690_s11 = sphi %s723_s11, %s880_s11   ;;  %s686_s10 = sphi %s721_s10, %s879_s10   ;;  %s682_s9 = sphi %s719_s9, %s878_s9  }
   0x9   : > { %s33_s17 = sadd.s32 1, %s698_s13  ;;  %s42_s18 = sadd.s32 1, %s690_s11 }
   0xa   : > { %p35_p0 = scmp.ge.s32.totalorder %s33_s17, 2  ;;  %p49_p1 = scmp.ne.s32.totalorder %s690_s11, %s686_s10 }
   0xb   : > { %p50_p2 = scmp.eq.s32.totalorder %s702_s14, 0  ;;  %p55_p3 = scmp.ne.s32.totalorder %s686_s10, %s682_s9 }
   0xc   : > { %s884_s17 = smov (%p35_p0, %s33_s17), 0  ;;  %p56_p5 = scmp.eq.s32.totalorder %s461_s15, 0 }
   0xd   : > { %p760_p4 = por %p50_p2, %p49_p1  ;;  %s37_s20 = ssub.s32 %s698_s13, %s884_s17 }
   0xe   : > { %p109_p6 = scmp.eq.s32.totalorder %s461_s15, 1  ;;  %p40_p7 = scmp.eq.s32.totalorder %s37_s20, 0 }
   0xf   : > { %p766_p8 = por %p56_p5, %p55_p3  ;;  %p115_p10 = scmp.eq.s32.totalorder %s462_s16, 1 }
  0x10   : > { %p770_p9 = por %p109_p6, %p49_p1  ;;  %p464_p12 = scmp.ge.s32.totalorder %s702_s14, 2 }
  0x11   : > { %s775_s23 = scalar_select %p40_p7, %s690_s11, %s42_s18  }
  0x12   : > { %p777_p11 = por %p115_p10, %p55_p3  ;;  %p496_p13 = scmp.lt.s32.totalorder %s702_s14, 2 }
  0x13   : > { %s135_s25 = sand.u32 1, %s690_s11   ;;  %s478_s27 = sshll.u32 %s698_s13, 3 }
  0x14   : > { %s465_s26 = sshll.u32 %s135_s25, 3  ;;  %s146_s30 = scalar_lea.hbm %s870_s0, %s478_s27 }
  0x15   : > { %s139_s3 = scalar_lea.vmem [#allocation2], %s465_s26  ;;  %s148_s5 = sshll.u32 %s146_s30, 4  ;;  %s149_s5 = int_to_ptr.hbm [resolvable:$true] %s148_s5 }
  0x16   : > { %s150_s4 = sshll.u32 %s139_s3, 4  ;;  %p790_p0 = pnand %p496_p13, %p760_p4  ;;  %s151_s4 = int_to_ptr.vmem [resolvable:$true] %s150_s4 }
  0x17   : > { %p470_p1 = scmp.ge.s32.totalorder %s702_s14, 1  ;;  %p176_p2 = scmp.lt.s32.totalorder %s702_s14, 3 }
  0x18   : > { %s136_s7 = scalar_lea.sflag [#allocation3], %s135_s25  ;;  %s468_s8 = sshll.u32 %s135_s25, 1 }
  0x19   : > { %488 = dma.hbm_to_vmem [thread:$0]  (!%p790_p0), %s149_s5, 128, %s151_s4, %s136_s7  }
  0x1a   : > { %p177_p3 = pnand %p470_p1, %p176_p2  ;;  %s469_s15 = sshll.u32 %s698_s13, 1 }
  0x1b   : > { %s167_s20 = scalar_lea.hbm %s871_s1, %s469_s15  ;;  %s161_s26 = scalar_lea.vmem [#allocation5], %s468_s8 }
  0x1c   : > { %s171_s19 = sshll.u32 %s161_s26, 4  ;;  %s169_s27 = sshll.u32 %s167_s20, 4  ;;  %s172_s19 = int_to_ptr.vmem [resolvable:$true] %s171_s19  ;;  %s170_s27 = int_to_ptr.hbm [resolvable:$true] %s169_s27 }
  0x1d   : > { %s158_s28 = scalar_lea.sflag [#allocation6], %s135_s25  ;;  %180 = sbr.rel (%p177_p3) target bundleno = 132 (0x84), region = 28 }
  0x1e   : > { %491 = dma.hbm_to_vmem [thread:$0]  (!%p790_p0), %s170_s27, 32, %s172_s19, %s158_s28  }
  0x1f   : > { %s805_s29 = sand.u32 (!%p177_p3), 1, %s686_s10  }
  0x20   : > { %s471_s30 = sshll.u32 (!%p177_p3), %s805_s29, 3  ;;  %s183_s3 = scalar_lea.sflag (!%p177_p3), [#allocation3], %s805_s29 }
  0x21   : > { %s186_s4 = scalar_lea.vmem (!%p177_p3), [#allocation2], %s471_s30 }
  0x22   : > { %669 = dma.done.wait (%p766_p8), %s183_s3, 128  }
  0x23   : > { %671 = vsyncadd (%p766_p8), %s183_s3, 4294967168  ;;  %s472_s25 = sshll.u32 %s805_s29, 1  ;;  %s193_s5 = scalar_lea.sflag [#allocation6], %s805_s29 }
  0x24   : > { %s196_s6 = scalar_lea.vmem [#allocation5], %s472_s25 }
  0x25   : > { %673 = dma.done.wait (%p766_p8), %s193_s5, 32  }
  0x26   : > { %675 = vsyncadd (%p766_p8), %s193_s5, 4294967264  ;;  %v226_v0 = vld [vmem:[%s186_s4] sm:$0xff]  ;;  %vm234_vm0 = vcmask 1043456   ;;  %v283_v22 = vlaneseq  ;;  %v227_v23 = vld [vmem:[%s196_s6] sm:$0x3]  ;;  %s475_s21 = sshll.u32 %s694_s12, 1 }
  0x27   : > { %229 = vst [vmem:[#allocation1] ss:$2 sm:$0xff] %v226_v0  ;;  %v285_v31 = vperm.slane %v227_v23, 0  ;;  %v286_v32 = vperm.slane %v227_v23, 1  ;;  %s348_s15 = scalar_lea.hbm %s872_s2, %s475_s21  ;;  %s222_s16 = scalar_lea.vmem [#allocation7], %s472_s25  ;;  %vm327_vm3 = vcmask 1040384  }
  0x28   : > { %v284_v28 = vshrl.u32 %v283_v22, 7  ;;  %s350_s18 = sshll.u32 %s222_s16, 4  ;;  %s352_s20 = sshll.u32 %s348_s15, 4  ;;  %vm332_vm4 = vcmp.lt.s32.totalorder %v283_v22, 256  ;;  %s351_s18 = int_to_ptr.vmem [resolvable:$true] %s350_s18  ;;  %s353_s20 = int_to_ptr.hbm [resolvable:$true] %s352_s20 }
  0x29   : > { %s336_s12 = scalar_lea.sflag [#allocation4], %s805_s29  ;;  %s630_s26 = sshra.s32 %s353_s20, 4  ;;  %s631_s26 = int_to_ptr.hbm [resolvable:$true] %s630_s26 }
  0x2a   : > { %vm287_vm1 = vcmp.eq.s32.totalorder %v284_v28, %v285_v31  ;;  %vm288_vm2 = vcmp.eq.s32.totalorder %v284_v28, %v286_v32  ;;  %s632_s19 = scalar_lea.hbm %s631_s26, 2  ;;  %s636_s30 = scalar_lea.hbm %s872_s2, 4 }
  0x2b   : > { %p633_p4 = scmp.ne.s32.totalorder %s631_s26, %s632_s19  ;;  %p637_p7 = scmp.lt.s32.totalorder %s631_s26, %s872_s2 }
  0x2c   : > { %p638_p8 = scmp.lt.s32.totalorder %s636_s30, %s632_s19 }
  0x2d   : > { %p634_p5 = pnand %p633_p4, %p770_p9 }
  0x2e   : > { %v230_v1 = vld.sshfl [vmem:[#allocation1] sm:$0xff pattern:$0x75316420]  ;;  %v231_v2 = vld.sshfl [vmem:[#allocation1 + $0x8] sm:$0xff pattern:$0x75316420]  ;;  %p639_p10 = por %p638_p8, %p637_p7 }
  0x2f   : > { %v235_v3 = vsel %vm234_vm0, %v230_v1, -inf  ;;  %v242_v4 = vsel %vm234_vm0, %v231_v2, -inf  ;;  %p635_p6 = pneg %p634_p5 }
  0x30   : > { %v236_v5 = vrot.slane %v235_v3, 4  ;;  %v243_v6 = vrot.slane %v242_v4, 4 }
  0x31   : > { %p640_p13 = pnand %p639_p10, %p635_p6 }
  0x32   : > { %v237_v7 = vmax.f32 %v235_v3, %v236_v5  ;;  %v244_v8 = vmax.f32 %v242_v4, %v243_v6 }
  0x34   : > { %v238_v9 = vrot.slane %v237_v7, 2  ;;  %v245_v10 = vrot.slane %v244_v8, 2 }
  0x36   : > { %v239_v11 = vmax.f32 %v237_v7, %v238_v9  ;;  %v246_v12 = vmax.f32 %v244_v8, %v245_v10 }
  0x38   : > { %v240_v13 = vrot.slane %v239_v11, 1  ;;  %v247_v14 = vrot.slane %v246_v12, 1 }
  0x3a   : > { %v248_v15 = vmax.f32 %v246_v12, %v247_v14  ;;  %v241_v16 = vmax.f32 %v239_v11, %v240_v13 }
  0x3c   : > { %v251_v17 = vrot.slane %v248_v15, 4 }
  0x3e   : > { %v252_v18 = vsel %vm234_vm0, %v241_v16, %v251_v17 }
  0x3f   : > { %v254_v19 = vsub.f32 %v226_v0, %v252_v18 }
  0x41   : > { %v255_v20 = vmul.f32 1.442695, %v254_v19 }
  0x43   : > { %546 = vpow2.f32 %v255_v20 }
  0x49   : > { %v547_v21 = vpop.eup %546 }
  0x4a   : > { %258 = vst [vmem:[#allocation1] ss:$2 sm:$0xff] %v547_v21 }
  0x51   : > { %v259_v24 = vld.sshfl [vmem:[#allocation1] sm:$0xff pattern:$0x75316420]  ;;  %v260_v25 = vld.sshfl [vmem:[#allocation1 + $0x8] sm:$0xff pattern:$0x75316420] }
  0x52   : > { %v263_v26 = vsel %vm234_vm0, %v259_v24, 0.0  ;;  %v270_v27 = vsel %vm234_vm0, %v260_v25, 0.0  ;;  %289 = vst [vmem:[#allocation1] ss:$2 sm:$0xff] %v226_v0 }
  0x53   : > { %v264_v29 = vrot.slane %v263_v26, 4  ;;  %v271_v30 = vrot.slane %v270_v27, 4 }
  0x55   : > { %v265_v33 = vadd.f32 %v264_v29, %v263_v26  ;;  %v272_v34 = vadd.f32 %v271_v30, %v270_v27 }
  0x57   : > { %v266_v35 = vrot.slane %v265_v33, 2  ;;  %v273_v36 = vrot.slane %v272_v34, 2 }
  0x59   : > { %v267_v37 = vadd.f32 %v266_v35, %v265_v33  ;;  %v274_v38 = vadd.f32 %v273_v36, %v272_v34  ;;  %v290_v39 = vld.sshfl [vmem:[#allocation1] sm:$0xff pattern:$0x75316420]  ;;  %v291_v40 = vld.sshfl [vmem:[#allocation1 + $0x8] sm:$0xff pattern:$0x75316420] }
  0x5a   : > { %v294_v41 = vsel %vm287_vm1, %v290_v39, 0.0  ;;  %v295_v42 = vsel %vm288_vm2, %v291_v40, 0.0 }
  0x5b   : > { %v268_v43 = vrot.slane %v267_v37, 1  ;;  %v275_v44 = vrot.slane %v274_v38, 1  ;;  %v296_v45 = vsel %vm234_vm0, %v294_v41, 0.0  ;;  %v303_v46 = vsel %vm234_vm0, %v295_v42, 0.0 }
  0x5c   : > { %v297_v47 = vrot.slane %v296_v45, 4  ;;  %v304_v48 = vrot.slane %v303_v46, 4 }
  0x5d   : > { %v269_v49 = vadd.f32 %v268_v43, %v267_v37  ;;  %v276_v50 = vadd.f32 %v275_v44, %v274_v38 }
  0x5e   : > { %v298_v51 = vadd.f32 %v297_v47, %v296_v45  ;;  %v305_v52 = vadd.f32 %v304_v48, %v303_v46 }
  0x5f   : > { %548 = vlog2.f32 %v269_v49 }
  0x60   : > { %550 = vlog2.f32 %v276_v50  ;;  %v299_v53 = vrot.slane %v298_v51, 2  ;;  %v306_v54 = vrot.slane %v305_v52, 2 }
  0x62   : > { %v300_v55 = vadd.f32 %v299_v53, %v298_v51  ;;  %v307_v56 = vadd.f32 %v306_v54, %v305_v52 }
  0x64   : > { %v301_v57 = vrot.slane %v300_v55, 1  ;;  %v308_v59 = vrot.slane %v307_v56, 1 }
  0x65   : > { %v549_v58 = vpop.eup %548 }
  0x66   : > { %v551_v60 = vpop.eup %550  ;;  %v278_v61 = vmul.f32 0.6931472, %v549_v58  ;;  %v302_v0 = vadd.f32 %v301_v57, %v300_v55  ;;  %v309_v2 = vadd.f32 %v308_v59, %v307_v56 }
  0x67   : > { %v280_v62 = vmul.f32 0.6931472, %v551_v60 }
  0x68   : > { %v281_v63 = vadd.f32 %v278_v61, %v241_v16 }
  0x69   : > { %v282_v1 = vadd.f32 %v280_v62, %v248_v15 }
  0x6a   : > { %v310_v3 = vsub.f32 %v302_v0, %v281_v63 }
  0x6b   : > { %v311_v4 = vsub.f32 %v309_v2, %v282_v1 }
  0x6c   : > { %v312_v5 = vmul.f32 1.442695, %v310_v3 }
  0x6d   : > { %v314_v6 = vmul.f32 1.442695, %v311_v4 }
  0x6e   : > { %552 = vpow2.f32 %v312_v5 }
  0x6f   : > { %554 = vpow2.f32 %v314_v6 }
  0x74   : > { %v553_v7 = vpop.eup %552 }
  0x75   : > { %v555_v8 = vpop.eup %554  ;;  %v316_v9 = vsub.f32 1.0, %v553_v7 }
  0x76   : > { %v317_v10 = vsub.f32 1.0, %v555_v8 }
  0x77   : > { %v318_v11 = vmul.f32 %v316_v9, %v316_v9 }
  0x78   : > { %v319_v12 = vmul.f32 %v317_v10, %v317_v10 }
  0x79   : > { %v320_v13 = vsub.f32 0.0, %v318_v11 }
  0x7a   : > { %v321_v14 = vsub.f32 0.0, %v319_v12 }
  0x7b   : > { %v322_v16 = vmul.f32 %v320_v13, %v310_v3 }
  0x7c   : > { %v323_v15 = vmul.f32 %v321_v14, %v311_v4 }
  0x7e   : > { %v326_v17 = vrot.slane %v323_v15, 7 }
  0x80   : > { %v328_v18 = vsel %vm327_vm3, %v322_v16, %v326_v17 }
  0x81   : > { %334 = vst.msk [vmem:[%s222_s16] sm:$0x3] %vm332_vm4, %v328_v18 }
  0x82   : > { %643 = shalt.err (!%p640_p13)
}
  0x83   : > { %483 = dma.vmem_to_hbm [thread:$0]  (%p770_p9), %s351_s18, 32, %s353_s20, %s336_s12  }
  0x84 PF: > { %s364_s29 = sand.u32 1, %s682_s9   ;;  %p493_p0 = pnand %p464_p12, %p777_p11 }
  0x85   : > { %s365_s25 = scalar_lea.sflag [#allocation4], %s364_s29 }
  0x86   : > { %p494_p1 = pneg %p493_p0 }
  0x88   : > { %677 = dma.done.wait (%p494_p1), %s365_s25, 32  }
  0x89   : > { %679 = vsyncadd (%p494_p1), %s365_s25, 4294967264  ;;  %s21_s14 = sadd.s32 1, %s702_s14   ;;  %s878_s9 = smov %s686_s10 }
  0x8a   : > { %p18_p2 = scmp.ge.s32.totalorder %s21_s14, 4   ;;  %s879_s10 = smov %s690_s11 }
  0x8b   : > { %s880_s11 = smov %s775_s23  ;;  %s881_s12 = smov %s698_s13 }
  0x8c   : > { %s882_s13 = smov %s884_s17  ;;  %20 = sbr.rel (!%p18_p2) target bundleno = 8 (0x8), region = 86 }
  0x91   :  { %371 = vsyncpa [#allocation3], 1 }
  0x92   :  { %373 = vsyncpa [#allocation3 + $0x1], 1 }
  0x93   :  { %374 = vsyncpa [#allocation6], 1 }
  0x94   :  { %376 = vsyncpa [#allocation6 + $0x1], 1 }
  0x95   :  { %377 = vsyncpa [#allocation4], 1 }
  0x96   :  { %379 = vsyncpa [#allocation4 + $0x1], 1 }

</bundles_post_ra>
